<compile_context>
chip_gen: v7x
topology: tpu7x:2x2x1
jax: 0.10.0
libtpu: 0.0.40
codegen_flags: <defaults>
</compile_context>

<pallas_src>
import functools

import numpy as np
import jax
import jax.numpy as jnp
from jax import lax
from jax.experimental import pallas as pl
from jax.experimental.pallas import tpu as pltpu

_LANE = 128       # TPU vreg lane width
_SUBLANE = 8      # TPU vreg sublane count (f32)
_UNROLL_T_MAX = 32  # beyond this, full unroll would spill live (8,128) vregs


def _round_up(n, m):
    return ((n + m - 1) // m) * m


def vanilla_rnn_kernel(x_ref, whx_ref, whh_ref, wph_ref, bh_ref, bp_ref, p_ref):
    """Whole-problem kernel: recurrence + output projection, all resident in VMEM.

    x_ref  : (Bp, T)    raw batch-major input (batch padded to sublane width)
    whx_ref: (1, Hp)    input->hidden weights (input_dim == 1), lane-padded
    whh_ref: (Hp, Hp)   recurrent weights, zero-padded to a full MXU tile
    wph_ref: (Hp, Cp)   output projection, zero-padded
    bh_ref : (1, Hp)
    bp_ref : (1, Cp)
    p_ref  : (Bp, Cp)   lane-dense logits output
    """
    Bp, T = x_ref.shape
    Hp = whh_ref.shape[0]
    whh = whh_ref[...]                                    # (Hp, Hp)

    # Broadcasts hoisted once (JAX does not CSE broadcast_in_dim): only the
    # per-step x-column lane-broadcast remains inside the projection.
    whx_b = jnp.broadcast_to(whx_ref[...], (Bp, Hp))      # (Bp, Hp)
    bh_b = jnp.broadcast_to(bh_ref[...], (Bp, Hp))        # (Bp, Hp)

    if T <= _UNROLL_T_MAX:
        # Input projection + bias hoisted off the recurrent chain: every term
        # depends only on x/Whx/bh (never on h), so with the loop fully
        # unrolled the scheduler can compute them underneath the serial MXU
        # chain instead of per step inside the recurrence.
        x_all = x_ref[...]                                # single load, (Bp, T)
        pre = [x_all[:, t:t + 1] * whx_b + bh_b for t in range(T)]

        # Fully unrolled recurrence (T is a small static trip count).  h_0 == 0,
        # so the first step is just tanh(pre[0]) -- one fewer matmul on the
        # chain.  Padded lanes stay exactly 0: whx/bh/whh columns >= H are
        # zero, so tanh(0) == 0 is carried along harmlessly.
        h = jnp.tanh(pre[0])
        for t in range(1, T):
            h = jnp.tanh(pre[t] + jnp.dot(h, whh, preferred_element_type=jnp.float32))
    else:
        # Larger-T guard: avoid holding T live (Bp, Hp) vregs -- compute the
        # input projection inside the step and use a modestly-unrolled
        # fori_loop (dead code at the default T=10).
        h = jnp.tanh(x_ref[:, pl.ds(0, 1)] * whx_b + bh_b)

        def body(t, h):
            pre_t = x_ref[:, pl.ds(t, 1)] * whx_b + bh_b
            return jnp.tanh(pre_t + jnp.dot(h, whh, preferred_element_type=jnp.float32))

        h = lax.fori_loop(1, T, body, h, unroll=4)

    p_ref[...] = (jnp.dot(h, wph_ref[...], preferred_element_type=jnp.float32)
                  + bp_ref[...]).astype(p_ref.dtype)


def prepare_vanilla_rnn_params(Whx, Whh, Wph, bh, bp):
    """Pad the parameters to (8,128)-aligned tiles ONCE at init time.

    Perf-review item #1: the six jnp.pad ops (and their ~130 KiB of redundant
    HBM traffic) are removed from the per-forward path; only the cheap x pad
    remains per call.
    """
    input_dim, H = Whx.shape
    C = Wph.shape[1]
    # The PyTorch forward (`x[:, t].unsqueeze(1) @ Whx`) only makes sense for
    # input_dim == 1; the kernel bakes in the same assumption.
    assert input_dim == 1, "VanillaRNN forward implies input_dim == 1"
    # TODO(synk): generalize the per-step input term to a real (B,D)@(D,H)
    # matmul if input_dim > 1 is ever needed.

    Hp = _round_up(max(H, _LANE), _LANE)
    Cp = _round_up(max(C, _LANE), _LANE)
    f32 = jnp.float32
    return {
        "whx": jnp.pad(Whx.astype(f32), ((0, 0), (0, Hp - H))),
        "whh": jnp.pad(Whh.astype(f32), ((0, Hp - H), (0, Hp - H))),
        "wph": jnp.pad(Wph.astype(f32), ((0, Hp - H), (0, Cp - C))),
        "bh": jnp.pad(bh.astype(f32), (0, Hp - H)).reshape(1, Hp),
        "bp": jnp.pad(bp.astype(f32), (0, Cp - C)).reshape(1, Cp),
        "H": H,
        "C": C,
    }


@jax.jit
def _forward_from_padded(x, whx_p, whh_p, wph_p, bh_p, bp_p):
    """Jitted hot path: pad x, run the kernel, slice padded batch rows only.

    Returns lane-dense (B, Cp) logits; the column slice to the real C is
    deferred to the caller (perf-review item: keep the store / return value
    lane-dense, the kernel is launch-overhead-bound).
    """
    B, T = x.shape
    Hp = whh_p.shape[0]
    Cp = bp_p.shape[1]
    Bp = _round_up(max(B, _SUBLANE), _SUBLANE)

    x_p = jnp.pad(x.astype(jnp.float32), ((0, Bp - B), (0, 0)))

    cost = pl.CostEstimate(
        flops=2 * (T - 1) * Bp * Hp * Hp + 2 * Bp * Hp * Cp + 3 * T * Bp * Hp,
        transcendentals=T * Bp * Hp,
        bytes_accessed=4 * (x_p.size + whx_p.size + whh_p.size + wph_p.size
                            + bh_p.size + bp_p.size + Bp * Cp),
    )

    vmem = pl.BlockSpec(memory_space=pltpu.MemorySpace.VMEM)
    p_padded = pl.pallas_call(
        vanilla_rnn_kernel,
        out_shape=jax.ShapeDtypeStruct((Bp, Cp), jnp.float32),
        in_specs=[vmem] * 6,
        out_specs=vmem,
        cost_estimate=cost,
    )(x_p, whx_p, whh_p, wph_p, bh_p, bp_p)
    # No grid: the whole problem is ~140 KiB of VMEM and latency-bound.  Only
    # if B scales up substantially would a leading batch grid axis with
    # dimension_semantics=("parallel",) pay off (v7x's 2 TCs), sized so the
    # double-buffered blocks stay under v7x's 32 MiB default scoped VMEM.
    return p_padded[:B, :]


def vanilla_rnn_forward(x, params, *, dense_cols=False):
    """x: (B, T) float32 -> logits.

    dense_cols=False (default): returns (B, C) exactly like the PyTorch module.
    dense_cols=True: returns the lane-dense (B, Cp) padded logits so a
    downstream consumer (loss / argmax) can absorb the column slice.
    """
    p = _forward_from_padded(x, params["whx"], params["whh"], params["wph"],
                             params["bh"], params["bp"])
    return p if dense_cols else p[:, :params["C"]]


def vanilla_rnn_reference(x, Whx, Whh, Wph, bh, bp):
    h = jnp.zeros((x.shape[0], Whh.shape[0]), jnp.float32)
    for t in range(x.shape[1]):
        h = jnp.tanh(x[:, t:t + 1] @ Whx + h @ Whh + bh[None, :])
    return h @ Wph + bp[None, :]


if __name__ == "__main__":
    # Module hyperparameters implied by the forward pass (input_dim must be 1).
    seq_length = 10
    input_dim = 1
    num_hidden = 32
    num_classes = 10
    batch_size = 8

    key = jax.random.PRNGKey(0)
    k_x, k_whx, k_whh, k_wph = jax.random.split(key, 4)

    # Deterministic parameter init matching nn.init.normal_(std=0.001) / constant 0.
    Whx = 0.001 * jax.random.normal(k_whx, (input_dim, num_hidden), jnp.float32)
    Whh = 0.001 * jax.random.normal(k_whh, (num_hidden, num_hidden), jnp.float32)
    Wph = 0.001 * jax.random.normal(k_wph, (num_hidden, num_classes), jnp.float32)
    bh = jnp.zeros((num_hidden,), jnp.float32)
    bp = jnp.zeros((num_classes,), jnp.float32)

    x = jax.random.normal(k_x, (batch_size, seq_length), jnp.float32)

    # Pad the weights once (init-time), then run the jitted forward.
    params = prepare_vanilla_rnn_params(Whx, Whh, Wph, bh, bp)
    out = jax.block_until_ready(vanilla_rnn_forward(x, params))

    ref = vanilla_rnn_reference(x, Whx, Whh, Wph, bh, bp)
    np.testing.assert_allclose(np.asarray(out), np.asarray(ref), rtol=1e-5, atol=1e-5)

    print("KERNEL_OK")
</pallas_src>

<mosaic_0001>
module attributes {stable_mosaic.version = 11 : i64} {
  func.func @vanilla_rnn_kernel(%arg0: memref<8x10xf32, #tpu.memory_space<vmem>>, %arg1: memref<1x128xf32, #tpu.memory_space<vmem>>, %arg2: memref<128x128xf32, #tpu.memory_space<vmem>>, %arg3: memref<128x128xf32, #tpu.memory_space<vmem>>, %arg4: memref<1x128xf32, #tpu.memory_space<vmem>>, %arg5: memref<1x128xf32, #tpu.memory_space<vmem>>, %arg6: memref<8x128xf32, #tpu.memory_space<vmem>>) attributes {dimension_semantics = [], scalar_prefetch = 0 : i64, scratch_operands = 0 : i64, tpu.core_type = #tpu.core_type<tc>} {
    %c0 = arith.constant 0 : index
    %c0_0 = arith.constant 0 : index
    %0 = vector.load %arg2[%c0, %c0_0] : memref<128x128xf32, #tpu.memory_space<vmem>>, vector<128x128xf32>
    %c0_1 = arith.constant 0 : index
    %c0_2 = arith.constant 0 : index
    %1 = vector.load %arg1[%c0_1, %c0_2] : memref<1x128xf32, #tpu.memory_space<vmem>>, vector<1x128xf32>
    %2 = vector.shape_cast %1 : vector<1x128xf32> to vector<1x128xf32>
    %3 = vector.broadcast %2 : vector<1x128xf32> to vector<8x128xf32>
    %c0_3 = arith.constant 0 : index
    %c0_4 = arith.constant 0 : index
    %4 = vector.load %arg4[%c0_3, %c0_4] : memref<1x128xf32, #tpu.memory_space<vmem>>, vector<1x128xf32>
    %5 = vector.shape_cast %4 : vector<1x128xf32> to vector<1x128xf32>
    %6 = vector.broadcast %5 : vector<1x128xf32> to vector<8x128xf32>
    %c0_5 = arith.constant 0 : index
    %c0_6 = arith.constant 0 : index
    %7 = vector.load %arg0[%c0_5, %c0_6] : memref<8x10xf32, #tpu.memory_space<vmem>>, vector<8x10xf32>
    %8 = vector.extract_strided_slice %7 {offsets = [0, 0], sizes = [8, 1], strides = [1, 1]} : vector<8x10xf32> to vector<8x1xf32>
    %9 = vector.broadcast %8 : vector<8x1xf32> to vector<8x128xf32>
    %10 = arith.mulf %9, %3 : vector<8x128xf32>
    %11 = arith.addf %10, %6 : vector<8x128xf32>
    %12 = vector.extract_strided_slice %7 {offsets = [0, 1], sizes = [8, 1], strides = [1, 1]} : vector<8x10xf32> to vector<8x1xf32>
    %13 = vector.broadcast %12 : vector<8x1xf32> to vector<8x128xf32>
    %14 = arith.mulf %13, %3 : vector<8x128xf32>
    %15 = arith.addf %14, %6 : vector<8x128xf32>
    %16 = vector.extract_strided_slice %7 {offsets = [0, 2], sizes = [8, 1], strides = [1, 1]} : vector<8x10xf32> to vector<8x1xf32>
    %17 = vector.broadcast %16 : vector<8x1xf32> to vector<8x128xf32>
    %18 = arith.mulf %17, %3 : vector<8x128xf32>
    %19 = arith.addf %18, %6 : vector<8x128xf32>
    %20 = vector.extract_strided_slice %7 {offsets = [0, 3], sizes = [8, 1], strides = [1, 1]} : vector<8x10xf32> to vector<8x1xf32>
    %21 = vector.broadcast %20 : vector<8x1xf32> to vector<8x128xf32>
    %22 = arith.mulf %21, %3 : vector<8x128xf32>
    %23 = arith.addf %22, %6 : vector<8x128xf32>
    %24 = vector.extract_strided_slice %7 {offsets = [0, 4], sizes = [8, 1], strides = [1, 1]} : vector<8x10xf32> to vector<8x1xf32>
    %25 = vector.broadcast %24 : vector<8x1xf32> to vector<8x128xf32>
    %26 = arith.mulf %25, %3 : vector<8x128xf32>
    %27 = arith.addf %26, %6 : vector<8x128xf32>
    %28 = vector.extract_strided_slice %7 {offsets = [0, 5], sizes = [8, 1], strides = [1, 1]} : vector<8x10xf32> to vector<8x1xf32>
    %29 = vector.broadcast %28 : vector<8x1xf32> to vector<8x128xf32>
    %30 = arith.mulf %29, %3 : vector<8x128xf32>
    %31 = arith.addf %30, %6 : vector<8x128xf32>
    %32 = vector.extract_strided_slice %7 {offsets = [0, 6], sizes = [8, 1], strides = [1, 1]} : vector<8x10xf32> to vector<8x1xf32>
    %33 = vector.broadcast %32 : vector<8x1xf32> to vector<8x128xf32>
    %34 = arith.mulf %33, %3 : vector<8x128xf32>
    %35 = arith.addf %34, %6 : vector<8x128xf32>
    %36 = vector.extract_strided_slice %7 {offsets = [0, 7], sizes = [8, 1], strides = [1, 1]} : vector<8x10xf32> to vector<8x1xf32>
    %37 = vector.broadcast %36 : vector<8x1xf32> to vector<8x128xf32>
    %38 = arith.mulf %37, %3 : vector<8x128xf32>
    %39 = arith.addf %38, %6 : vector<8x128xf32>
    %40 = vector.extract_strided_slice %7 {offsets = [0, 8], sizes = [8, 1], strides = [1, 1]} : vector<8x10xf32> to vector<8x1xf32>
    %41 = vector.broadcast %40 : vector<8x1xf32> to vector<8x128xf32>
    %42 = arith.mulf %41, %3 : vector<8x128xf32>
    %43 = arith.addf %42, %6 : vector<8x128xf32>
    %44 = vector.extract_strided_slice %7 {offsets = [0, 9], sizes = [8, 1], strides = [1, 1]} : vector<8x10xf32> to vector<8x1xf32>
    %45 = vector.broadcast %44 : vector<8x1xf32> to vector<8x128xf32>
    %46 = arith.mulf %45, %3 : vector<8x128xf32>
    %47 = arith.addf %46, %6 : vector<8x128xf32>
    %48 = math.tanh %11 : vector<8x128xf32>
    %cst = arith.constant dense<0.000000e+00> : vector<8x128xf32>
    %49 = tpu.matmul %48, %0, %cst {dimension_numbers = #tpu.dot_dimension_numbers<[1], [0], [0], [1], [0, 0, 1, 1], [], []>} : vector<8x128xf32>, vector<128x128xf32>, vector<8x128xf32> -> vector<8x128xf32>
    %50 = arith.addf %15, %49 : vector<8x128xf32>
    %51 = math.tanh %50 : vector<8x128xf32>
    %cst_7 = arith.constant dense<0.000000e+00> : vector<8x128xf32>
    %52 = tpu.matmul %51, %0, %cst_7 {dimension_numbers = #tpu.dot_dimension_numbers<[1], [0], [0], [1], [0, 0, 1, 1], [], []>} : vector<8x128xf32>, vector<128x128xf32>, vector<8x128xf32> -> vector<8x128xf32>
    %53 = arith.addf %19, %52 : vector<8x128xf32>
    %54 = math.tanh %53 : vector<8x128xf32>
    %cst_8 = arith.constant dense<0.000000e+00> : vector<8x128xf32>
    %55 = tpu.matmul %54, %0, %cst_8 {dimension_numbers = #tpu.dot_dimension_numbers<[1], [0], [0], [1], [0, 0, 1, 1], [], []>} : vector<8x128xf32>, vector<128x128xf32>, vector<8x128xf32> -> vector<8x128xf32>
    %56 = arith.addf %23, %55 : vector<8x128xf32>
    %57 = math.tanh %56 : vector<8x128xf32>
    %cst_9 = arith.constant dense<0.000000e+00> : vector<8x128xf32>
    %58 = tpu.matmul %57, %0, %cst_9 {dimension_numbers = #tpu.dot_dimension_numbers<[1], [0], [0], [1], [0, 0, 1, 1], [], []>} : vector<8x128xf32>, vector<128x128xf32>, vector<8x128xf32> -> vector<8x128xf32>
    %59 = arith.addf %27, %58 : vector<8x128xf32>
    %60 = math.tanh %59 : vector<8x128xf32>
    %cst_10 = arith.constant dense<0.000000e+00> : vector<8x128xf32>
    %61 = tpu.matmul %60, %0, %cst_10 {dimension_numbers = #tpu.dot_dimension_numbers<[1], [0], [0], [1], [0, 0, 1, 1], [], []>} : vector<8x128xf32>, vector<128x128xf32>, vector<8x128xf32> -> vector<8x128xf32>
    %62 = arith.addf %31, %61 : vector<8x128xf32>
    %63 = math.tanh %62 : vector<8x128xf32>
    %cst_11 = arith.constant dense<0.000000e+00> : vector<8x128xf32>
    %64 = tpu.matmul %63, %0, %cst_11 {dimension_numbers = #tpu.dot_dimension_numbers<[1], [0], [0], [1], [0, 0, 1, 1], [], []>} : vector<8x128xf32>, vector<128x128xf32>, vector<8x128xf32> -> vector<8x128xf32>
    %65 = arith.addf %35, %64 : vector<8x128xf32>
    %66 = math.tanh %65 : vector<8x128xf32>
    %cst_12 = arith.constant dense<0.000000e+00> : vector<8x128xf32>
    %67 = tpu.matmul %66, %0, %cst_12 {dimension_numbers = #tpu.dot_dimension_numbers<[1], [0], [0], [1], [0, 0, 1, 1], [], []>} : vector<8x128xf32>, vector<128x128xf32>, vector<8x128xf32> -> vector<8x128xf32>
    %68 = arith.addf %39, %67 : vector<8x128xf32>
    %69 = math.tanh %68 : vector<8x128xf32>
    %cst_13 = arith.constant dense<0.000000e+00> : vector<8x128xf32>
    %70 = tpu.matmul %69, %0, %cst_13 {dimension_numbers = #tpu.dot_dimension_numbers<[1], [0], [0], [1], [0, 0, 1, 1], [], []>} : vector<8x128xf32>, vector<128x128xf32>, vector<8x128xf32> -> vector<8x128xf32>
    %71 = arith.addf %43, %70 : vector<8x128xf32>
    %72 = math.tanh %71 : vector<8x128xf32>
    %cst_14 = arith.constant dense<0.000000e+00> : vector<8x128xf32>
    %73 = tpu.matmul %72, %0, %cst_14 {dimension_numbers = #tpu.dot_dimension_numbers<[1], [0], [0], [1], [0, 0, 1, 1], [], []>} : vector<8x128xf32>, vector<128x128xf32>, vector<8x128xf32> -> vector<8x128xf32>
    %74 = arith.addf %47, %73 : vector<8x128xf32>
    %75 = math.tanh %74 : vector<8x128xf32>
    %c0_15 = arith.constant 0 : index
    %c0_16 = arith.constant 0 : index
    %76 = vector.load %arg3[%c0_15, %c0_16] : memref<128x128xf32, #tpu.memory_space<vmem>>, vector<128x128xf32>
    %cst_17 = arith.constant dense<0.000000e+00> : vector<8x128xf32>
    %77 = tpu.matmul %75, %76, %cst_17 {dimension_numbers = #tpu.dot_dimension_numbers<[1], [0], [0], [1], [0, 0, 1, 1], [], []>} : vector<8x128xf32>, vector<128x128xf32>, vector<8x128xf32> -> vector<8x128xf32>
    %c0_18 = arith.constant 0 : index
    %c0_19 = arith.constant 0 : index
    %78 = vector.load %arg5[%c0_18, %c0_19] : memref<1x128xf32, #tpu.memory_space<vmem>>, vector<1x128xf32>
    %79 = vector.broadcast %78 : vector<1x128xf32> to vector<8x128xf32>
    %80 = arith.addf %77, %79 : vector<8x128xf32>
    %c0_20 = arith.constant 0 : index
    %c0_21 = arith.constant 0 : index
    %81 = vector.load %arg6[%c0_20, %c0_21] : memref<8x128xf32, #tpu.memory_space<vmem>>, vector<8x128xf32>
    tpu.vector_store %arg6[%c0_20, %c0_21], %80 {strides = array<i32>} : memref<8x128xf32, #tpu.memory_space<vmem>>, vector<8x128xf32>,
    return
  }
}

</mosaic_0001>

<bundles_post_ra>
// kernel: _forward_from_padded.1
= control target key start
LH: loop header
LB: loop body
LE: loop exit
PB: predicated region body
PF: predicated region fallthrough
CT: control target
= control target key end

     0   :  { %11 = vsyncpa [#allocation3], 0  ;;  %s2162_s0 = inlined_call_operand.hbm [shape: f32[8,10], index: 0, kind: input, shape index: {}]   ;;  %s2163_s1 = inlined_call_operand.vmem [shape: f32[1,128], index: 1, kind: input, shape index: {}]   ;;  %s2164_s2 = inlined_call_operand.hbm [shape: f32[128,128], index: 2, kind: input, shape index: {}]   ;;  %s2165_s3 = inlined_call_operand.hbm [shape: f32[128,128], index: 3, kind: input, shape index: {}]   ;;  %s2166_s4 = inlined_call_operand.vmem [shape: f32[1,128], index: 4, kind: input, shape index: {}]   ;;  %s2167_s5 = inlined_call_operand.vmem [shape: f32[1,128], index: 5, kind: input, shape index: {}]   ;;  %s2168_s6 = inlined_call_operand.hbm [shape: f32[8,128], index: 6, kind: output, shape index: {}]  }
   0x1   :  { %12 = vsyncpa [#allocation6], 0 }
   0x2   :  { %13 = vsyncpa [#allocation4], 0  ;;  %s1821_s21 = smov [#allocation5]   ;;  %s1727_s25 = scalar_lea.hbm %s2164_s2, 2048 }
   0x3   :  { %s31_s22 = sshll.u32 %s1821_s21, 4  ;;  %p1728_p0 = scmp.ne.s32.totalorder %s2164_s2, %s1727_s25  ;;  %s32_s22 = int_to_ptr.vmem [resolvable:$true] %s31_s22 }
   0x4   :  { %p1731_p1 = scmp.lt.u32.totalorder %s1727_s25, %s2164_s2 }
   0x6   :  { %p1733_p2 = pnand %p1731_p1, %p1728_p0 }
   0x8   :  { %1736 = shalt.err (!%p1733_p2)
}
   0x9   :  { %s1737_s30 = scalar_lea.vmem %s32_s22, 2048  ;;  %p1742_p4 = scmp.lt.s32.totalorder %s32_s22, %s32_s22 }
   0xa   :  { %p1738_p3 = scmp.ne.s32.totalorder %s32_s22, %s1737_s30  ;;  %p1743_p5 = scmp.lt.s32.totalorder %s1737_s30, %s1737_s30 }
   0xc   :  { %p1744_p6 = por %p1743_p5, %p1742_p4 }
   0xe   :  { %p1745_p7 = pnand %p1744_p6, %p1738_p3 }
  0x10   :  { %1748 = shalt.err (!%p1745_p7)
}
  0x11   :  { %s1822_s7 = smov 128   ;;  %s1823_s8 = smov 8  }
  0x12   :  { %37 = dma.hbm_to_vmem [thread:$0]  %s2164_s2, 2048, %s32_s22, [#allocation6], %s1822_s7, %s1822_s7, %s1823_s8  }
  0x13   :  { %s1824_s11 = smov [#allocation2]   ;;  %s1825_s13 = smov [#allocation7]  }
  0x14   :  { %s20_s12 = sshll.u32 %s1824_s11, 4  ;;  %s43_s14 = sshll.u32 %s1825_s13, 4  ;;  %s21_s12 = int_to_ptr.vmem [resolvable:$true] %s20_s12  ;;  %s44_s14 = int_to_ptr.vmem [resolvable:$true] %s43_s14 }
  0x15   :  { %s1749_s17 = scalar_lea.hbm %s2162_s0, 128 }
  0x16   :  { %p1750_p8 = scmp.ne.s32.totalorder %s2162_s0, %s1749_s17  ;;  %p1753_p9 = scmp.lt.u32.totalorder %s1749_s17, %s2162_s0 }
  0x18   :  { %p1755_p10 = pnand %p1753_p9, %p1750_p8 }
  0x1a   :  { %1758 = shalt.err (!%p1755_p10)
}
  0x1b   :  { %s1759_s2 = scalar_lea.vmem %s21_s12, 128  ;;  %p1764_p12 = scmp.lt.s32.totalorder %s21_s12, %s21_s12 }
  0x1c   :  { %p1760_p11 = scmp.ne.s32.totalorder %s21_s12, %s1759_s2  ;;  %p1765_p13 = scmp.lt.s32.totalorder %s1759_s2, %s1759_s2 }
  0x1e   :  { %p1766_p0 = por %p1765_p13, %p1764_p12 }
  0x20   :  { %p1767_p1 = pnand %p1766_p0, %p1760_p11 }
  0x22   :  { %1770 = shalt.err (!%p1767_p1)
}
  0x23   :  { %23 = dma.hbm_to_vmem [thread:$0]  %s2162_s0, 128, %s21_s12, [#allocation3]  }
  0x24   :  { %s1771_s26 = scalar_lea.hbm %s2165_s3, 2048 }
  0x25   :  { %p1772_p2 = scmp.ne.s32.totalorder %s2165_s3, %s1771_s26  ;;  %p1775_p3 = scmp.lt.u32.totalorder %s1771_s26, %s2165_s3 }
  0x27   :  { %p1777_p4 = pnand %p1775_p3, %p1772_p2 }
  0x29   :  { %1780 = shalt.err (!%p1777_p4)
}
  0x2a   :  { %s1781_s9 = scalar_lea.vmem %s44_s14, 2048  ;;  %p1786_p6 = scmp.lt.s32.totalorder %s44_s14, %s44_s14 }
  0x2b   :  { %p1782_p5 = scmp.ne.s32.totalorder %s44_s14, %s1781_s9  ;;  %p1787_p7 = scmp.lt.s32.totalorder %s1781_s9, %s1781_s9 }
  0x2d   :  { %p1788_p8 = por %p1787_p7, %p1786_p6 }
  0x2f   :  { %p1789_p9 = pnand %p1788_p8, %p1782_p5 }
  0x31   :  { %1792 = shalt.err (!%p1789_p9)
}
  0x32   :  { %49 = dma.hbm_to_vmem [thread:$0]  %s2165_s3, 2048, %s44_s14, [#allocation6], %s1822_s7, %s1822_s7, %s1823_s8  }
  0x33   :  { %1815 = dma.done.wait [#allocation3], 128  }
  0x34   :  { %1816 = vsyncadd [#allocation3], 4294967168 }
  0x35   :  { %1817 = dma.done.wait [#allocation6], 4096  }
  0x36   :  { %1818 = vsyncadd [#allocation6], 4294963200  ;;  %v1826_v0 = vmov 0   ;;  %v1827_v1 = vmov 0.0|0.0   ;;  %v1919_v2 = vld [vmem:[#allocation2] sm:$0xff]  ;;  %v63_v3 = vld [vmem:[#allocation5] sm:$0xff] }
  0x37   :  { %1696 = vset.pattern.permute.xlu0 %v1826_v0  ;;  %1437 = vmatprep.subr.bf16.mxu0 %v1827_v1  ;;  %v64_v4 = vld [vmem:[#allocation5 + $0x8] sm:$0xff]  ;;  %v65_v6 = vld [vmem:[#allocation5 + $0x10] sm:$0xff]  ;;  %v66_v7 = vld [vmem:[#allocation5 + $0x18] sm:$0xff]  ;;  %vm1828_vm0 = vmmov 0   ;;  %v1829_v11 = vmov 0.0   ;;  %v1830_v21 = vmov 1  }
  0x38   :  { %1461 = vmatprep.subr.bf16.mxu1 %v1827_v1  ;;  %96 = vperm.xlu0 %1696, %v1919_v2   ;;  %v1922_v5 = vpack.c.bf16 %v64_v4, %v63_v3  ;;  %v1925_v8 = vpack.c.bf16 %v66_v7, %v65_v6  ;;  %v67_v9 = vld [vmem:[#allocation5 + $0x20] sm:$0xff]  ;;  %v68_v10 = vld [vmem:[#allocation5 + $0x28] sm:$0xff]  ;;  %v69_v13 = vld [vmem:[#allocation5 + $0x30] sm:$0xff]  ;;  %v1831_v35 = vmov 2   ;;  %v1832_v43 = vmov 3   ;;  %s1839_s12 = smov [#allocation8]  }
  0x39   :  { %1119 = vmatprep.mubr.msk.f32.mxu0 %vm1828_vm0, %v1829_v11  ;;  %1154 = vmatprep.mubr.msk.f32.mxu1 %vm1828_vm0, %v1829_v11  ;;  %v1935_v12 = vpack.c.bf16 %v68_v10, %v67_v9  ;;  %v70_v14 = vld [vmem:[#allocation5 + $0x38] sm:$0xff]  ;;  %v71_v16 = vld [vmem:[#allocation5 + $0x40] sm:$0xff]  ;;  %v72_v17 = vld [vmem:[#allocation5 + $0x48] sm:$0xff]  ;;  %v1833_v51 = vmov 4   ;;  %v1834_v59 = vmov 5   ;;  %v1835_v6 = vmov 6  }
  0x3a   :  { %1439 = vmatpush3.bf16.msra.mxu0 %v1922_v5  ;;  %1463 = vmatpush3.bf16.msra.mxu1 %v1922_v5  ;;  %v1941_v15 = vpack.c.bf16 %v70_v14, %v69_v13  ;;  %v1947_v18 = vpack.c.bf16 %v72_v17, %v71_v16  ;;  %v73_v19 = vld [vmem:[#allocation5 + $0x50] sm:$0xff]  ;;  %v74_v20 = vld [vmem:[#allocation5 + $0x58] sm:$0xff]  ;;  %v75_v23 = vld [vmem:[#allocation5 + $0x60] sm:$0xff]  ;;  %s904_s13 = sshll.u32 %s1839_s12, 4  ;;  %s905_s13 = int_to_ptr.vmem [resolvable:$true] %s904_s13 }
  0x3b   :  { %1440 = vmatprep.subr.bf16.mxu0 %v1827_v1  ;;  %1464 = vmatprep.subr.bf16.mxu1 %v1827_v1  ;;  %v1954_v22 = vpack.c.bf16 %v74_v20, %v73_v19  ;;  %v76_v24 = vld [vmem:[#allocation5 + $0x68] sm:$0xff]  ;;  %v77_v26 = vld [vmem:[#allocation5 + $0x70] sm:$0xff]  ;;  %v78_v27 = vld [vmem:[#allocation5 + $0x78] sm:$0xff]  ;;  %v1836_v19 = vmov 7   ;;  %s1793_s14 = scalar_lea.vmem %s905_s13, 128  ;;  %p1798_p11 = scmp.lt.s32.totalorder %s905_s13, %s905_s13 }
  0x3c   :  { %1697 = vset.pattern.permute.xlu0 %v1830_v21  ;;  %v1960_v25 = vpack.c.bf16 %v76_v24, %v75_v23  ;;  %v1966_v28 = vpack.c.bf16 %v78_v27, %v77_v26  ;;  %v1978_v29 = vld [vmem:[%s2163_s1] ss:$0 sm:$0xff]  ;;  %1698 = vset.pattern.permute.xlu1 %v1831_v35  ;;  %v1838_v35 = vmov 9   ;;  %p1794_p10 = scmp.ne.s32.totalorder %s905_s13, %s1793_s14  ;;  %p1799_p12 = scmp.lt.s32.totalorder %s1793_s14, %s1793_s14 }
  0x3d   :  { %102 = vperm.xlu0 %1697, %v1919_v2   ;;  %v1983_v31 = vld [vmem:[%s2166_s4] ss:$0 sm:$0xff]  ;;  %108 = vperm.xlu1 %1698, %v1919_v2  }
  0x3e   :  { %1442 = vmatpush3.bf16.msra.mxu0 %v1925_v8  ;;  %1466 = vmatpush3.bf16.msra.mxu1 %v1925_v8  ;;  %p1800_p13 = por %p1799_p12, %p1798_p11 }
  0x3f   :  { %1443 = vmatprep.subr.bf16.mxu0 %v1827_v1  ;;  %1467 = vmatprep.subr.bf16.mxu1 %v1827_v1 }
  0x40   :  { %p1801_p0 = pnand %p1800_p13, %p1794_p10 }
  0x41   :  { %1699 = vset.pattern.permute.xlu1 %v1832_v43  ;;  %1701 = vset.pattern.permute.xlu0 %v1834_v59  ;;  %v818_v59 = vld [vmem:[#allocation7 + $0x70] sm:$0xff] }
  0x42   :  { %1445 = vmatpush3.bf16.msra.mxu0 %v1935_v12  ;;  %1469 = vmatpush3.bf16.msra.mxu1 %v1935_v12 }
  0x43   :  { %1446 = vmatprep.subr.bf16.mxu0 %v1827_v1  ;;  %1470 = vmatprep.subr.bf16.mxu1 %v1827_v1 }
  0x44   :  { %114 = vperm.xlu1 %1699, %v1919_v2   ;;  %126 = vperm.xlu0 %1701, %v1919_v2  }
  0x46   :  { %1448 = vmatpush3.bf16.msra.mxu0 %v1941_v15  ;;  %1472 = vmatpush3.bf16.msra.mxu1 %v1941_v15 }
  0x47   :  { %1449 = vmatprep.subr.bf16.mxu0 %v1827_v1  ;;  %1473 = vmatprep.subr.bf16.mxu1 %v1827_v1 }
  0x48   :  { %1700 = vset.pattern.permute.xlu1 %v1833_v51 }
  0x49   :  { %120 = vperm.xlu1 %1700, %v1919_v2  }
  0x4a   :  { %1451 = vmatpush3.bf16.msra.mxu0 %v1947_v18  ;;  %1475 = vmatpush3.bf16.msra.mxu1 %v1947_v18 }
  0x4b   :  { %1452 = vmatprep.subr.bf16.mxu0 %v1827_v1  ;;  %1476 = vmatprep.subr.bf16.mxu1 %v1827_v1 }
  0x4d   :  { %1702 = vset.pattern.permute.xlu1 %v1835_v6 }
  0x4e   :  { %1454 = vmatpush3.bf16.msra.mxu0 %v1954_v22  ;;  %1478 = vmatpush3.bf16.msra.mxu1 %v1954_v22 }
  0x4f   :  { %1455 = vmatprep.subr.bf16.mxu0 %v1827_v1  ;;  %1479 = vmatprep.subr.bf16.mxu1 %v1827_v1 }
  0x50   :  { %132 = vperm.xlu1 %1702, %v1919_v2  }
  0x52   :  { %1457 = vmatpush3.bf16.msra.mxu0 %v1960_v25  ;;  %1481 = vmatpush3.bf16.msra.mxu1 %v1960_v25 }
  0x53   :  { %1458 = vmatprep.subr.bf16.mxu0 %v1827_v1  ;;  %1482 = vmatprep.subr.bf16.mxu1 %v1827_v1 }
  0x54   :  { %1703 = vset.pattern.permute.xlu1 %v1836_v19 }
  0x55   :  { %138 = vperm.xlu1 %1703, %v1919_v2  }
  0x56   :  { %1460 = vmatpush3.bf16.msra.mxu0 %v1966_v28  ;;  %1484 = vmatpush3.bf16.msra.mxu1 %v1966_v28 }
  0x57   :  { %1485 = vmatprep.subr.bf16.mxu0 %v1827_v1  ;;  %1509 = vmatprep.subr.bf16.mxu1 %v1827_v1 }
  0x59   :  { %1705 = vset.pattern.permute.xlu1 %v1838_v35 }
  0x5a   :  { %150 = vperm.xlu1 %1705, %v1919_v2  }
  0xb7   :  { %v97_v30 = vpop.permute.xlu0 %96 }
  0xb8   :  { %v99_v32 = vmul.f32 %v1978_v29, %v97_v30 }
  0xba   :  { %v100_v33 = vadd.f32 %v1983_v31, %v99_v32 }
  0xbc   :  { %1707 = vtanh.f32 %v100_v33  ;;  %v103_v36 = vpop.permute.xlu0 %102  ;;  %v109_v44 = vpop.permute.xlu1 %108 }
  0xbd   :  { %v105_v37 = vmul.f32 %v1978_v29, %v103_v36  ;;  %v111_v45 = vmul.f32 %v1978_v29, %v109_v44  ;;  %v812_v44 = vld [vmem:[#allocation7 + $0x40] sm:$0xff] }
  0xbf   :  { %v106_v38 = vadd.f32 %v1983_v31, %v105_v37  ;;  %v112_v46 = vadd.f32 %v1983_v31, %v111_v45  ;;  %v807_v37 = vld [vmem:[#allocation7 + $0x18] sm:$0xff]  ;;  %v813_v45 = vld [vmem:[#allocation7 + $0x48] sm:$0xff] }
  0xc3   :  { %v115_v52 = vpop.permute.xlu1 %114  ;;  %v127_v7 = vpop.permute.xlu0 %126 }
  0xc4   :  { %v117_v53 = vmul.f32 %v1978_v29, %v115_v52  ;;  %v129_v9 = vmul.f32 %v1978_v29, %v127_v7 }
  0xc6   :  { %v1708_v34 = vpop.eup %1707  ;;  %v118_v54 = vadd.f32 %v1983_v31, %v117_v53  ;;  %v130_v10 = vadd.f32 %v1983_v31, %v129_v9  ;;  %v814_v53 = vld [vmem:[#allocation7 + $0x50] sm:$0xff]  ;;  %v916_v9 = vld [vmem:[%s2167_s5] ss:$0 sm:$0xff] }
  0xc7   :  { %1120 = vmatmul.mubr.f32.vlgmr.msra.gmra.mrb[0].mxu0 %v1708_v34  ;;  %v806_v34 = vld [vmem:[#allocation7 + $0x10] sm:$0xff] }
  0xc8   :  { %1487 = vmatpush3.bf16.msra.mxu0 %v1922_v5  ;;  %1189 = vmatprep.mubr.msk.f32.mxu0 %vm1828_vm0, %v1829_v11  ;;  %v121_v60 = vpop.permute.xlu1 %120 }
  0xc9   :  { %1488 = vmatprep.subr.bf16.mxu0 %v1827_v1  ;;  %v123_v61 = vmul.f32 %v1978_v29, %v121_v60  ;;  %v819_v60 = vld [vmem:[#allocation7 + $0x78] sm:$0xff] }
  0xcb   :  { %v124_v62 = vadd.f32 %v1983_v31, %v123_v61  ;;  %v1675_v61 = vpack.c.bf16 %v819_v60, %v818_v59 }
  0xcc   :  { %1490 = vmatpush3.bf16.msra.mxu0 %v1925_v8 }
  0xcd   :  { %1491 = vmatprep.subr.bf16.mxu0 %v1827_v1 }
  0xcf   :  { %v133_v20 = vpop.permute.xlu1 %132 }
  0xd0   :  { %1493 = vmatpush3.bf16.msra.mxu0 %v1935_v12  ;;  %v135_v21 = vmul.f32 %v1978_v29, %v133_v20 }
  0xd1   :  { %1494 = vmatprep.subr.bf16.mxu0 %v1827_v1 }
  0xd2   :  { %v136_v23 = vadd.f32 %v1983_v31, %v135_v21 }
  0xd4   :  { %1496 = vmatpush3.bf16.msra.mxu0 %v1941_v15 }
  0xd5   :  { %1497 = vmatprep.subr.bf16.mxu0 %v1827_v1 }
  0xd8   :  { %1499 = vmatpush3.bf16.msra.mxu0 %v1947_v18 }
  0xd9   :  { %1500 = vmatprep.subr.bf16.mxu0 %v1827_v1 }
  0xdc   :  { %1502 = vmatpush3.bf16.msra.mxu0 %v1954_v22 }
  0xdd   :  { %1503 = vmatprep.subr.bf16.mxu0 %v1827_v1 }
  0xe0   :  { %1505 = vmatpush3.bf16.msra.mxu0 %v1960_v25 }
  0xe1   :  { %1506 = vmatprep.subr.bf16.mxu0 %v1827_v1 }
  0xe4   :  { %1508 = vmatpush3.bf16.msra.mxu0 %v1966_v28 }
  0xe5   :  { %1533 = vmatprep.subr.bf16.mxu0 %v1827_v1 }
 0x19a   :  { %v222_v39 = vpop.f32.mrb[0].mxu0 }
 0x19b   :  { %v226_v40 = vadd.f32 %v222_v39, %v106_v38  ;;  %v1121_v41 = vpop.f32.mrb[1].mxu0  ;;  %v1657_v38 = vpack.c.bf16 %v807_v37, %v806_v34  ;;  %v808_v39 = vld [vmem:[#allocation7 + $0x20] sm:$0xff] }
 0x19d   :  { %1709 = vtanh.f32 %v226_v40  ;;  %v809_v40 = vld [vmem:[#allocation7 + $0x28] sm:$0xff] }
 0x19e   :  { %v1660_v41 = vpack.c.bf16 %v809_v40, %v808_v39 }
 0x1a7   :  { %v1710_v42 = vpop.eup %1709 }
 0x1a8   :  { %1155 = vmatmul.mubr.f32.vlgmr.msra.gmra.mrb[0].mxu1 %v1710_v42  ;;  %v811_v42 = vld [vmem:[#allocation7 + $0x38] sm:$0xff] }
 0x1a9   :  { %1511 = vmatpush3.bf16.msra.mxu1 %v1922_v5  ;;  %1224 = vmatprep.mubr.msk.f32.mxu1 %vm1828_vm0, %v1829_v11 }
 0x1aa   :  { %1512 = vmatprep.subr.bf16.mxu1 %v1827_v1 }
 0x1ad   :  { %1514 = vmatpush3.bf16.msra.mxu1 %v1925_v8 }
 0x1ae   :  { %1515 = vmatprep.subr.bf16.mxu1 %v1827_v1 }
 0x1b1   :  { %1517 = vmatpush3.bf16.msra.mxu1 %v1935_v12 }
 0x1b2   :  { %1518 = vmatprep.subr.bf16.mxu1 %v1827_v1 }
 0x1b5   :  { %1520 = vmatpush3.bf16.msra.mxu1 %v1941_v15 }
 0x1b6   :  { %1521 = vmatprep.subr.bf16.mxu1 %v1827_v1 }
 0x1b9   :  { %1523 = vmatpush3.bf16.msra.mxu1 %v1947_v18 }
 0x1ba   :  { %1524 = vmatprep.subr.bf16.mxu1 %v1827_v1 }
 0x1bd   :  { %1526 = vmatpush3.bf16.msra.mxu1 %v1954_v22 }
 0x1be   :  { %1527 = vmatprep.subr.bf16.mxu1 %v1827_v1 }
 0x1c1   :  { %1529 = vmatpush3.bf16.msra.mxu1 %v1960_v25 }
 0x1c2   :  { %1530 = vmatprep.subr.bf16.mxu1 %v1827_v1 }
 0x1c5   :  { %1532 = vmatpush3.bf16.msra.mxu1 %v1966_v28 }
 0x1c6   :  { %1557 = vmatprep.subr.bf16.mxu1 %v1827_v1 }
 0x27b   :  { %v294_v47 = vpop.f32.mrb[0].mxu1 }
 0x27c   :  { %v298_v48 = vadd.f32 %v294_v47, %v112_v46  ;;  %v1156_v49 = vpop.f32.mrb[1].mxu1 }
 0x27e   :  { %1711 = vtanh.f32 %v298_v48 }
 0x288   :  { %v1712_v50 = vpop.eup %1711 }
 0x289   :  { %1190 = vmatmul.mubr.f32.vlgmr.msra.gmra.mrb[2].mxu0 %v1712_v50 }
 0x28a   :  { %1535 = vmatpush3.bf16.msra.mxu0 %v1922_v5  ;;  %1259 = vmatprep.mubr.msk.f32.mxu0 %vm1828_vm0, %v1829_v11 }
 0x28b   :  { %1536 = vmatprep.subr.bf16.mxu0 %v1827_v1 }
 0x28e   :  { %1538 = vmatpush3.bf16.msra.mxu0 %v1925_v8 }
 0x28f   :  { %1539 = vmatprep.subr.bf16.mxu0 %v1827_v1 }
 0x292   :  { %1541 = vmatpush3.bf16.msra.mxu0 %v1935_v12 }
 0x293   :  { %1542 = vmatprep.subr.bf16.mxu0 %v1827_v1 }
 0x296   :  { %1544 = vmatpush3.bf16.msra.mxu0 %v1941_v15 }
 0x297   :  { %1545 = vmatprep.subr.bf16.mxu0 %v1827_v1 }
 0x29a   :  { %1547 = vmatpush3.bf16.msra.mxu0 %v1947_v18 }
 0x29b   :  { %1548 = vmatprep.subr.bf16.mxu0 %v1827_v1 }
 0x29e   :  { %1550 = vmatpush3.bf16.msra.mxu0 %v1954_v22 }
 0x29f   :  { %1551 = vmatprep.subr.bf16.mxu0 %v1827_v1 }
 0x2a2   :  { %1553 = vmatpush3.bf16.msra.mxu0 %v1960_v25 }
 0x2a3   :  { %1554 = vmatprep.subr.bf16.mxu0 %v1827_v1 }
 0x2a6   :  { %1556 = vmatpush3.bf16.msra.mxu0 %v1966_v28 }
 0x2a7   :  { %1581 = vmatprep.subr.bf16.mxu0 %v1827_v1 }
 0x35c   :  { %v366_v55 = vpop.f32.mrb[2].mxu0 }
 0x35d   :  { %v370_v56 = vadd.f32 %v366_v55, %v118_v54  ;;  %v1191_v57 = vpop.f32.mrb[3].mxu0  ;;  %v815_v54 = vld [vmem:[#allocation7 + $0x58] sm:$0xff] }
 0x35e   :  { %v1669_v55 = vpack.c.bf16 %v815_v54, %v814_v53  ;;  %v817_v57 = vld [vmem:[#allocation7 + $0x68] sm:$0xff] }
 0x35f   :  { %1713 = vtanh.f32 %v370_v56  ;;  %v816_v56 = vld [vmem:[#allocation7 + $0x60] sm:$0xff] }
 0x369   :  { %v1714_v58 = vpop.eup %1713 }
 0x36a   :  { %1225 = vmatmul.mubr.f32.vlgmr.msra.gmra.mrb[2].mxu1 %v1714_v58  ;;  %v1672_v58 = vpack.c.bf16 %v817_v57, %v816_v56 }
 0x36b   :  { %1559 = vmatpush3.bf16.msra.mxu1 %v1922_v5  ;;  %1294 = vmatprep.mubr.msk.f32.mxu1 %vm1828_vm0, %v1829_v11 }
 0x36c   :  { %1560 = vmatprep.subr.bf16.mxu1 %v1827_v1 }
 0x36f   :  { %1562 = vmatpush3.bf16.msra.mxu1 %v1925_v8 }
 0x370   :  { %1563 = vmatprep.subr.bf16.mxu1 %v1827_v1 }
 0x373   :  { %1565 = vmatpush3.bf16.msra.mxu1 %v1935_v12 }
 0x374   :  { %1566 = vmatprep.subr.bf16.mxu1 %v1827_v1 }
 0x377   :  { %1568 = vmatpush3.bf16.msra.mxu1 %v1941_v15 }
 0x378   :  { %1569 = vmatprep.subr.bf16.mxu1 %v1827_v1 }
 0x37b   :  { %1571 = vmatpush3.bf16.msra.mxu1 %v1947_v18 }
 0x37c   :  { %1572 = vmatprep.subr.bf16.mxu1 %v1827_v1 }
 0x37f   :  { %1574 = vmatpush3.bf16.msra.mxu1 %v1954_v22 }
 0x380   :  { %1575 = vmatprep.subr.bf16.mxu1 %v1827_v1 }
 0x383   :  { %1577 = vmatpush3.bf16.msra.mxu1 %v1960_v25 }
 0x384   :  { %1578 = vmatprep.subr.bf16.mxu1 %v1827_v1 }
 0x387   :  { %1580 = vmatpush3.bf16.msra.mxu1 %v1966_v28 }
 0x388   :  { %1605 = vmatprep.subr.bf16.mxu1 %v1827_v1 }
 0x43d   :  { %v438_v63 = vpop.f32.mrb[2].mxu1 }
 0x43e   :  { %v442_v0 = vadd.f32 %v438_v63, %v124_v62  ;;  %v1226_v3 = vpop.f32.mrb[3].mxu1 }
 0x440   :  { %1715 = vtanh.f32 %v442_v0 }
 0x44a   :  { %v1716_v4 = vpop.eup %1715 }
 0x44b   :  { %1260 = vmatmul.mubr.f32.vlgmr.msra.gmra.mrb[4].mxu0 %v1716_v4 }
 0x44c   :  { %1583 = vmatpush3.bf16.msra.mxu0 %v1922_v5  ;;  %1329 = vmatprep.mubr.msk.f32.mxu0 %vm1828_vm0, %v1829_v11 }
 0x44d   :  { %1584 = vmatprep.subr.bf16.mxu0 %v1827_v1 }
 0x450   :  { %1586 = vmatpush3.bf16.msra.mxu0 %v1925_v8 }
 0x451   :  { %1587 = vmatprep.subr.bf16.mxu0 %v1827_v1 }
 0x454   :  { %1589 = vmatpush3.bf16.msra.mxu0 %v1935_v12 }
 0x455   :  { %1590 = vmatprep.subr.bf16.mxu0 %v1827_v1 }
 0x458   :  { %1592 = vmatpush3.bf16.msra.mxu0 %v1941_v15 }
 0x459   :  { %1593 = vmatprep.subr.bf16.mxu0 %v1827_v1 }
 0x45c   :  { %1595 = vmatpush3.bf16.msra.mxu0 %v1947_v18 }
 0x45d   :  { %1596 = vmatprep.subr.bf16.mxu0 %v1827_v1 }
 0x460   :  { %1598 = vmatpush3.bf16.msra.mxu0 %v1954_v22 }
 0x461   :  { %1599 = vmatprep.subr.bf16.mxu0 %v1827_v1 }
 0x464   :  { %1601 = vmatpush3.bf16.msra.mxu0 %v1960_v25 }
 0x465   :  { %1602 = vmatprep.subr.bf16.mxu0 %v1827_v1 }
 0x468   :  { %1604 = vmatpush3.bf16.msra.mxu0 %v1966_v28 }
 0x469   :  { %1629 = vmatprep.subr.bf16.mxu0 %v1827_v1 }
 0x51e   :  { %v510_v13 = vpop.f32.mrb[4].mxu0 }
 0x51f   :  { %v514_v14 = vadd.f32 %v510_v13, %v130_v10  ;;  %v1261_v16 = vpop.f32.mrb[5].mxu0 }
 0x521   :  { %1717 = vtanh.f32 %v514_v14 }
 0x52b   :  { %v1718_v17 = vpop.eup %1717 }
 0x52c   :  { %1295 = vmatmul.mubr.f32.vlgmr.msra.gmra.mrb[4].mxu1 %v1718_v17 }
 0x52d   :  { %1607 = vmatpush3.bf16.msra.mxu1 %v1922_v5  ;;  %1364 = vmatprep.mubr.msk.f32.mxu1 %vm1828_vm0, %v1829_v11 }
 0x52e   :  { %1608 = vmatprep.subr.bf16.mxu1 %v1827_v1 }
 0x531   :  { %1610 = vmatpush3.bf16.msra.mxu1 %v1925_v8 }
 0x532   :  { %1611 = vmatprep.subr.bf16.mxu1 %v1827_v1 }
 0x535   :  { %1613 = vmatpush3.bf16.msra.mxu1 %v1935_v12 }
 0x536   :  { %1614 = vmatprep.subr.bf16.mxu1 %v1827_v1 }
 0x539   :  { %1616 = vmatpush3.bf16.msra.mxu1 %v1941_v15 }
 0x53a   :  { %1617 = vmatprep.subr.bf16.mxu1 %v1827_v1 }
 0x53d   :  { %1619 = vmatpush3.bf16.msra.mxu1 %v1947_v18 }
 0x53e   :  { %1620 = vmatprep.subr.bf16.mxu1 %v1827_v1 }
 0x541   :  { %1622 = vmatpush3.bf16.msra.mxu1 %v1954_v22 }
 0x542   :  { %1623 = vmatprep.subr.bf16.mxu1 %v1827_v1 }
 0x545   :  { %1625 = vmatpush3.bf16.msra.mxu1 %v1960_v25 }
 0x546   :  { %1626 = vmatprep.subr.bf16.mxu1 %v1827_v1 }
 0x549   :  { %1628 = vmatpush3.bf16.msra.mxu1 %v1966_v28 }
 0x54a   :  { %1653 = vmatprep.subr.bf16.mxu1 %v1827_v1 }
 0x5ff   :  { %v582_v24 = vpop.f32.mrb[4].mxu1 }
 0x600   :  { %v586_v26 = vadd.f32 %v582_v24, %v136_v23  ;;  %v1296_v27 = vpop.f32.mrb[5].mxu1 }
 0x602   :  { %1719 = vtanh.f32 %v586_v26 }
 0x60c   :  { %v1720_v30 = vpop.eup %1719 }
 0x60d   :  { %1330 = vmatmul.mubr.f32.vlgmr.msra.gmra.mrb[6].mxu0 %v1720_v30 }
 0x60e   :  { %1631 = vmatpush3.bf16.msra.mxu0 %v1922_v5  ;;  %1399 = vmatprep.mubr.msk.f32.mxu0 %vm1828_vm0, %v1829_v11  ;;  %v1837_v5 = vmov 8  }
 0x60f   :  { %1632 = vmatprep.subr.bf16.mxu0 %v1827_v1  ;;  %1704 = vset.pattern.permute.xlu0 %v1837_v5 }
 0x610   :  { %144 = vperm.xlu0 %1704, %v1919_v2   ;;  %v1666_v2 = vpack.c.bf16 %v813_v45, %v812_v44 }
 0x612   :  { %1634 = vmatpush3.bf16.msra.mxu0 %v1925_v8  ;;  %v139_v8 = vpop.permute.xlu1 %138 }
 0x613   :  { %1635 = vmatprep.subr.bf16.mxu0 %v1827_v1 }
 0x614   :  { %1706 = vset.pattern.permute.xlu0 %v1838_v35 }
 0x616   :  { %1637 = vmatpush3.bf16.msra.mxu0 %v1935_v12  ;;  %v141_v12 = vmul.f32 %v1978_v29, %v139_v8  ;;  %v151_v62 = vpop.permute.xlu1 %150 }
 0x617   :  { %1638 = vmatprep.subr.bf16.mxu0 %v1827_v1  ;;  %v153_v63 = vmul.f32 %v1978_v29, %v151_v62 }
 0x619   :  { %v154_v0 = vadd.f32 %v1983_v31, %v153_v63 }
 0x61a   :  { %1640 = vmatpush3.bf16.msra.mxu0 %v1941_v15  ;;  %v142_v15 = vadd.f32 %v1983_v31, %v141_v12 }
 0x61b   :  { %1641 = vmatprep.subr.bf16.mxu0 %v1827_v1 }
 0x61e   :  { %1643 = vmatpush3.bf16.msra.mxu0 %v1947_v18 }
 0x61f   :  { %1644 = vmatprep.subr.bf16.mxu0 %v1827_v1 }
 0x622   :  { %1646 = vmatpush3.bf16.msra.mxu0 %v1954_v22 }
 0x623   :  { %1647 = vmatprep.subr.bf16.mxu0 %v1827_v1 }
 0x626   :  { %1649 = vmatpush3.bf16.msra.mxu0 %v1960_v25  ;;  %v804_v25 = vld [vmem:[#allocation7] sm:$0xff] }
 0x627   :  { %1650 = vmatprep.subr.bf16.mxu0 %v1827_v1 }
 0x62a   :  { %1652 = vmatpush3.bf16.msra.mxu0 %v1966_v28  ;;  %v805_v28 = vld [vmem:[#allocation7 + $0x8] sm:$0xff] }
 0x62b   :  { %v1654_v36 = vpack.c.bf16 %v805_v28, %v804_v25 }
 0x68f   :  { %v145_v46 = vpop.permute.xlu0 %144 }
 0x690   :  { %v147_v47 = vmul.f32 %v1978_v29, %v145_v46 }
 0x692   :  { %v148_v48 = vadd.f32 %v1983_v31, %v147_v47 }
 0x6e0   :  { %v654_v18 = vpop.f32.mrb[6].mxu0 }
 0x6e1   :  { %v658_v32 = vadd.f32 %v654_v18, %v142_v15  ;;  %v1331_v22 = vpop.f32.mrb[7].mxu0 }
 0x6e3   :  { %1721 = vtanh.f32 %v658_v32 }
 0x6ed   :  { %v1722_v33 = vpop.eup %1721 }
 0x6ee   :  { %1365 = vmatmul.mubr.f32.vlgmr.msra.gmra.mrb[6].mxu1 %v1722_v33 }
 0x6ef   :  { %1434 = vmatprep.mubr.msk.f32.mxu1 %vm1828_vm0, %v1829_v11  ;;  %1655 = vmatpush3.bf16.msra.mxu1 %v1654_v36  ;;  %v810_v11 = vld [vmem:[#allocation7 + $0x30] sm:$0xff] }
 0x6f0   :  { %1656 = vmatprep.subr.bf16.mxu1 %v1827_v1  ;;  %v1663_v43 = vpack.c.bf16 %v811_v42, %v810_v11 }
 0x6f3   :  { %1658 = vmatpush3.bf16.msra.mxu1 %v1657_v38 }
 0x6f4   :  { %1659 = vmatprep.subr.bf16.mxu1 %v1827_v1 }
 0x6f7   :  { %1661 = vmatpush3.bf16.msra.mxu1 %v1660_v41 }
 0x6f8   :  { %1662 = vmatprep.subr.bf16.mxu1 %v1827_v1 }
 0x6fb   :  { %1664 = vmatpush3.bf16.msra.mxu1 %v1663_v43 }
 0x6fc   :  { %1665 = vmatprep.subr.bf16.mxu1 %v1827_v1 }
 0x6ff   :  { %1667 = vmatpush3.bf16.msra.mxu1 %v1666_v2 }
 0x700   :  { %1668 = vmatprep.subr.bf16.mxu1 %v1827_v1 }
 0x703   :  { %1670 = vmatpush3.bf16.msra.mxu1 %v1669_v55 }
 0x704   :  { %1671 = vmatprep.subr.bf16.mxu1 %v1827_v1 }
 0x707   :  { %1673 = vmatpush3.bf16.msra.mxu1 %v1672_v58 }
 0x708   :  { %1674 = vmatprep.subr.bf16.mxu1 %v1827_v1 }
 0x70b   :  { %1676 = vmatpush3.bf16.msra.mxu1 %v1675_v61 }
 0x7c1   :  { %v726_v49 = vpop.f32.mrb[6].mxu1 }
 0x7c2   :  { %v730_v50 = vadd.f32 %v726_v49, %v148_v48  ;;  %v1366_v51 = vpop.f32.mrb[7].mxu1 }
 0x7c4   :  { %1723 = vtanh.f32 %v730_v50 }
 0x7ce   :  { %v1724_v52 = vpop.eup %1723 }
 0x7cf   :  { %1400 = vmatmul.mubr.f32.vlgmr.msra.gmra.mrb[8].mxu0 %v1724_v52 }
 0x8a2   :  { %v798_v3 = vpop.f32.mrb[8].mxu0 }
 0x8a3   :  { %v802_v4 = vadd.f32 %v798_v3, %v154_v0  ;;  %v1401_v6 = vpop.f32.mrb[9].mxu0 }
 0x8a5   :  { %1725 = vtanh.f32 %v802_v4 }
 0x8af   :  { %v1726_v7 = vpop.eup %1725 }
 0x8b0   :  { %1435 = vmatmul.mubr.f32.vlgmr.msra.gmra.mrb[8].mxu1 %v1726_v7 }
 0x983   :  { %v893_v10 = vpop.f32.mrb[8].mxu1 }
 0x984   :  { %v894_v1 = vadd.f32 %v916_v9, %v893_v10  ;;  %v1436_v13 = vpop.f32.mrb[9].mxu1 }
 0x986   :  { %897 = vst [vmem:[#allocation8] sm:$0xff] %v894_v1 }
 0x987   :  { %1804 = shalt.err (!%p1801_p0)
}
 0x988   :  { %s1805_s17 = scalar_lea.hbm %s2168_s6, 128 }
 0x989   :  { %p1806_p1 = scmp.ne.s32.totalorder %s2168_s6, %s1805_s17  ;;  %p1809_p2 = scmp.lt.u32.totalorder %s1805_s17, %s2168_s6 }
 0x98b   :  { %p1811_p3 = pnand %p1809_p2, %p1806_p1 }
 0x98d   :  { %1814 = shalt.err (!%p1811_p3)
}
 0x98e   :  { %907 = dma.vmem_to_hbm [thread:$0]  %s905_s13, 128, %s2168_s6, [#allocation4]  }
 0x98f   :  { %1819 = dma.done.wait [#allocation4], 128  }
 0x990   :  { %1820 = vsyncadd [#allocation4], 4294967168 }
 0x991   :  { %911 = vsyncpa [#allocation3], 1 }
 0x992   :  { %912 = vsyncpa [#allocation6], 1 }
 0x993   :  { %913 = vsyncpa [#allocation4], 1 }

</bundles_post_ra>
